<compile_context>
chip_gen: v7x
topology: tpu7x:2x2x1
jax: 0.10.0
libtpu: 0.0.40
codegen_flags: <defaults>
</compile_context>

<pallas_src>
import jax
import jax.numpy as jnp
from jax.experimental import pallas as pl
from jax.experimental.pallas import tpu as pltpu

LANES = 128       # vreg lane width
SUBLANES = 8      # f32 sublane count
BF16_ROWS = 16    # bf16 packs 2 rows/sublane -> align slab segments to 16 rows


def _round_up(n, m):
    return ((n + m - 1) // m) * m


# ---------------------------------------------------------------------------
# Parameter packing: one lane-dense bf16 slab, 16-row-aligned segments.
#   rows [w1_off, w1_off+obs_seg) : W1 (obs_size x hidden), zero padded
#   rows [b_off , b_off + 16)     : row 0 = b1, row 1 = b2, row 2 = b3
#   rows [w2_off, w2_off+width)   : W2 (hidden x hidden),   zero padded
#   rows [w3_off, w3_off+width)   : W3 (hidden x n_act),    zero padded
# width = 128 so every hidden activation is a full lane tile; the zero padding
# guarantees padded lanes stay exactly 0 through all three layers.
# ---------------------------------------------------------------------------
def pack_params(params, dtype=jnp.bfloat16):
    w1, b1 = params["w1"], params["b1"].reshape(-1)
    w2, b2 = params["w2"], params["b2"].reshape(-1)
    w3, b3 = params["w3"], params["b3"].reshape(-1)
    obs_size, hidden = w1.shape
    n_act = w3.shape[1]

    obs_seg = _round_up(obs_size, BF16_ROWS)
    width = _round_up(max(hidden, n_act), LANES)

    w1_off = 0
    b_off = w1_off + obs_seg
    w2_off = b_off + BF16_ROWS
    w3_off = w2_off + width
    total = w3_off + width

    slab = jnp.zeros((total, width), dtype)
    slab = slab.at[w1_off:w1_off + obs_size, :hidden].set(w1.astype(dtype))
    slab = slab.at[b_off + 0, :hidden].set(b1.astype(dtype))
    slab = slab.at[b_off + 1, :hidden].set(b2.astype(dtype))
    slab = slab.at[b_off + 2, :n_act].set(b3.astype(dtype))
    slab = slab.at[w2_off:w2_off + hidden, :hidden].set(w2.astype(dtype))
    slab = slab.at[w3_off:w3_off + hidden, :n_act].set(w3.astype(dtype))

    layout = dict(obs_size=obs_size, obs_seg=obs_seg, hidden=hidden,
                  n_act=n_act, width=width, w1_off=w1_off, b_off=b_off,
                  w2_off=w2_off, w3_off=w3_off, total=total)
    return slab, layout


def _make_kernel(layout):
    obs_size = layout["obs_size"]
    obs_seg = layout["obs_seg"]
    n_act = layout["n_act"]
    width = layout["width"]
    w1_off = layout["w1_off"]
    b_off = layout["b_off"]
    w2_off = layout["w2_off"]
    w3_off = layout["w3_off"]

    def kernel(x_ref, w_ref, o_ref):
        x = x_ref[...].astype(jnp.float32)                             # (TB, obs)
        w1 = w_ref[w1_off:w1_off + obs_seg, :].astype(jnp.float32)     # (obs_seg,128)
        bias = w_ref[b_off:b_off + BF16_ROWS, :].astype(jnp.float32)   # (16,128)
        w2 = w_ref[w2_off:w2_off + width, :]                           # (128,128) bf16
        w3 = w_ref[w3_off:w3_off + width, :]                           # (128,128) bf16
        b1 = bias[0:1, :]
        b2 = bias[1:2, :]
        b3 = bias[2:3, :]

        # Layer 1 on the VPU: K = obs_size (4 for CartPole) is far too small to
        # be worth an MXU round trip, and this lets x arrive un-padded.
        # TODO(synk): for large obs_size switch layer 1 back to an MXU dot.
        h1 = b1
        for k in range(obs_size):
            h1 = h1 + x[:, k:k + 1] * w1[k:k + 1, :]
        h1 = jnp.maximum(h1, 0.0)                                      # (TB,128) f32

        # Layers 2/3 on the MXU: bf16 operands, f32 accumulation; padded lanes
        # stay exactly 0 because the slab padding is zero.
        h2 = jnp.dot(h1.astype(jnp.bfloat16), w2,
                     preferred_element_type=jnp.float32)
        h2 = jnp.maximum(h2 + b2, 0.0)
        out = jnp.dot(h2.astype(jnp.bfloat16), w3,
                      preferred_element_type=jnp.float32) + b3

        # Narrow store: only the first n_act lanes are written back to HBM.
        o_ref[...] = out[:, :n_act].astype(o_ref.dtype)

    return kernel


def mlp_forward(x, packed, layout, *, tile_b=2048, core_parallel=False):
    """x: (batch, obs_size) -> logits (batch, n_act).

    `packed, layout = pack_params(params)` should be computed once and reused
    across RL steps.  Set core_parallel=True on v7x to shard the batch grid
    axis across its two TensorCores.
    """
    batch, obs_size = x.shape
    assert obs_size == layout["obs_size"]
    n_act = layout["n_act"]
    width = layout["width"]
    total = layout["total"]

    tile_b = _round_up(min(tile_b, _round_up(batch, SUBLANES)), SUBLANES)
    batch_pad = _round_up(batch, tile_b)
    grid = (batch_pad // tile_b,)

    x = x.astype(jnp.float32)
    if batch_pad != batch:
        # Fusable pad along the batch axis only; padded rows sliced away below.
        x = jnp.pad(x, ((0, batch_pad - batch), (0, 0)))

    dim_sem = (pltpu.CORE_PARALLEL,) if core_parallel else ("parallel",)

    out = pl.pallas_call(
        _make_kernel(layout),
        out_shape=jax.ShapeDtypeStruct((batch_pad, n_act), jnp.float32),
        grid_spec=pltpu.PrefetchScalarGridSpec(
            num_scalar_prefetch=0,
            grid=grid,
            in_specs=[
                # batch-tiled activations at their real width (full last dim),
                # double-buffered by the auto pipeline
                pl.BlockSpec((tile_b, obs_size), lambda i: (i, 0)),
                # packed bf16 weight slab: constant block index -> DMA'd once,
                # VMEM-resident for the whole grid
                pl.BlockSpec((total, width), lambda i: (0, 0)),
            ],
            out_specs=pl.BlockSpec((tile_b, n_act), lambda i: (i, 0)),
        ),
        compiler_params=pltpu.CompilerParams(dimension_semantics=dim_sem),
    )(x, packed)

    return out[:batch]


# ---------------------------------------------------------------------------
# Init + pure-JAX reference (f32 weights, matches the PyTorch module)
# ---------------------------------------------------------------------------
def init_params(key, obs_size, hidden_size, n_act):
    ks = jax.random.split(key, 6)

    def linear_init(kw, kb, fan_in, fan_out):
        bound = 1.0 / jnp.sqrt(fan_in)
        w = jax.random.uniform(kw, (fan_in, fan_out), jnp.float32, -bound, bound)
        b = jax.random.uniform(kb, (1, fan_out), jnp.float32, -bound, bound)
        return w, b

    w1, b1 = linear_init(ks[0], ks[1], obs_size, hidden_size)
    w2, b2 = linear_init(ks[2], ks[3], hidden_size, hidden_size)
    w3, b3 = linear_init(ks[4], ks[5], hidden_size, n_act)
    return {"w1": w1, "b1": b1, "w2": w2, "b2": b2, "w3": w3, "b3": b3}


def mlp_reference(x, p):
    h1 = jnp.maximum(x @ p["w1"] + p["b1"], 0.0)
    h2 = jnp.maximum(h1 @ p["w2"] + p["b2"], 0.0)
    return h2 @ p["w3"] + p["b3"]


if __name__ == "__main__":
    # CartPole-like sizes: obs_size=4, hidden=32, n_act=2.
    obs_size, hidden_size, n_act = 4, 32, 2

    key = jax.random.PRNGKey(0)
    k_params, k_x1, k_x2 = jax.random.split(key, 3)
    params = init_params(k_params, obs_size, hidden_size, n_act)
    packed, layout = pack_params(params)          # hoisted: reuse across steps

    fwd = jax.jit(lambda xb, pk: mlp_forward(xb, pk, layout))
    fwd_tiled = jax.jit(lambda xb, pk: mlp_forward(xb, pk, layout, tile_b=256))

    # Tolerances loosened vs the f32 reference because weights/MXU inputs are
    # bf16 (f32 accumulation).
    ATOL = RTOL = 3e-2

    # 1) Tiny per-step batch (single grid point, tile_b collapses to 8).
    x_small = jax.random.normal(k_x1, (8, obs_size), jnp.float32)
    out_small = jax.block_until_ready(fwd(x_small, packed))
    ref_small = mlp_reference(x_small, params)
    assert out_small.shape == (8, n_act)
    assert jnp.allclose(out_small, ref_small, atol=ATOL, rtol=RTOL), \
        "mismatch vs reference (small batch)"

    # 2) Amortized batch of environment states: tile_b=256 -> batch padded to
    #    1024, grid of 4 steps, exercises the pipelined / padded path.
    x_big = jax.random.normal(k_x2, (1000, obs_size), jnp.float32)
    out_big = jax.block_until_ready(fwd_tiled(x_big, packed))
    ref_big = mlp_reference(x_big, params)
    assert out_big.shape == (1000, n_act)
    assert jnp.allclose(out_big, ref_big, atol=ATOL, rtol=RTOL), \
        "mismatch vs reference (large batch)"

    print("KERNEL_OK")
</pallas_src>

<mosaic_0001>
module attributes {stable_mosaic.version = 11 : i64} {
  func.func @kernel(%arg0: i32, %arg1: memref<8x4xf32, #tpu.memory_space<vmem>>, %arg2: memref<288x128xbf16, #tpu.memory_space<vmem>>, %arg3: memref<8x2xf32, #tpu.memory_space<vmem>>) attributes {dimension_semantics = [#tpu.dimension_semantics<parallel>], iteration_bounds = array<i64: 1>, scalar_prefetch = 0 : i64, scratch_operands = 0 : i64, tpu.core_type = #tpu.core_type<tc>, window_params = [{transform_indices = @transform_0, window_bounds = array<i64: 8, 4>}, {pipeline_mode = #tpu.pipeline_mode<synchronous>, transform_indices = @transform_1, window_bounds = array<i64: 288, 128>}, {transform_indices = @transform_2, window_bounds = array<i64: 8, 2>}]} {
    %c0 = arith.constant 0 : index
    %c0_0 = arith.constant 0 : index
    %0 = vector.load %arg1[%c0, %c0_0] : memref<8x4xf32, #tpu.memory_space<vmem>>, vector<8x4xf32>
    %c0_1 = arith.constant 0 : index
    %c0_2 = arith.constant 0 : index
    %1 = vector.load %arg2[%c0_1, %c0_2] : memref<288x128xbf16, #tpu.memory_space<vmem>>, vector<16x128xbf16>
    %2 = arith.extf %1 : vector<16x128xbf16> to vector<16x128xf32>
    %c16 = arith.constant 16 : index
    %c0_3 = arith.constant 0 : index
    %3 = vector.load %arg2[%c16, %c0_3] : memref<288x128xbf16, #tpu.memory_space<vmem>>, vector<16x128xbf16>
    %4 = arith.extf %3 : vector<16x128xbf16> to vector<16x128xf32>
    %c32 = arith.constant 32 : index
    %c0_4 = arith.constant 0 : index
    %5 = vector.load %arg2[%c32, %c0_4] : memref<288x128xbf16, #tpu.memory_space<vmem>>, vector<128x128xbf16>
    %c160 = arith.constant 160 : index
    %c0_5 = arith.constant 0 : index
    %6 = vector.load %arg2[%c160, %c0_5] : memref<288x128xbf16, #tpu.memory_space<vmem>>, vector<128x128xbf16>
    %7 = vector.extract_strided_slice %4 {offsets = [0, 0], sizes = [1, 128], strides = [1, 1]} : vector<16x128xf32> to vector<1x128xf32>
    %8 = vector.extract_strided_slice %4 {offsets = [1, 0], sizes = [1, 128], strides = [1, 1]} : vector<16x128xf32> to vector<1x128xf32>
    %9 = vector.extract_strided_slice %4 {offsets = [2, 0], sizes = [1, 128], strides = [1, 1]} : vector<16x128xf32> to vector<1x128xf32>
    %10 = vector.extract_strided_slice %0 {offsets = [0, 0], sizes = [8, 1], strides = [1, 1]} : vector<8x4xf32> to vector<8x1xf32>
    %11 = vector.extract_strided_slice %2 {offsets = [0, 0], sizes = [1, 128], strides = [1, 1]} : vector<16x128xf32> to vector<1x128xf32>
    %12 = vector.broadcast %10 : vector<8x1xf32> to vector<8x128xf32>
    %13 = vector.broadcast %11 : vector<1x128xf32> to vector<8x128xf32>
    %14 = arith.mulf %12, %13 : vector<8x128xf32>
    %15 = vector.broadcast %7 : vector<1x128xf32> to vector<8x128xf32>
    %16 = arith.addf %15, %14 : vector<8x128xf32>
    %17 = vector.extract_strided_slice %0 {offsets = [0, 1], sizes = [8, 1], strides = [1, 1]} : vector<8x4xf32> to vector<8x1xf32>
    %18 = vector.extract_strided_slice %2 {offsets = [1, 0], sizes = [1, 128], strides = [1, 1]} : vector<16x128xf32> to vector<1x128xf32>
    %19 = vector.broadcast %17 : vector<8x1xf32> to vector<8x128xf32>
    %20 = vector.broadcast %18 : vector<1x128xf32> to vector<8x128xf32>
    %21 = arith.mulf %19, %20 : vector<8x128xf32>
    %22 = arith.addf %16, %21 : vector<8x128xf32>
    %23 = vector.extract_strided_slice %0 {offsets = [0, 2], sizes = [8, 1], strides = [1, 1]} : vector<8x4xf32> to vector<8x1xf32>
    %24 = vector.extract_strided_slice %2 {offsets = [2, 0], sizes = [1, 128], strides = [1, 1]} : vector<16x128xf32> to vector<1x128xf32>
    %25 = vector.broadcast %23 : vector<8x1xf32> to vector<8x128xf32>
    %26 = vector.broadcast %24 : vector<1x128xf32> to vector<8x128xf32>
    %27 = arith.mulf %25, %26 : vector<8x128xf32>
    %28 = arith.addf %22, %27 : vector<8x128xf32>
    %29 = vector.extract_strided_slice %0 {offsets = [0, 3], sizes = [8, 1], strides = [1, 1]} : vector<8x4xf32> to vector<8x1xf32>
    %30 = vector.extract_strided_slice %2 {offsets = [3, 0], sizes = [1, 128], strides = [1, 1]} : vector<16x128xf32> to vector<1x128xf32>
    %31 = vector.broadcast %29 : vector<8x1xf32> to vector<8x128xf32>
    %32 = vector.broadcast %30 : vector<1x128xf32> to vector<8x128xf32>
    %33 = arith.mulf %31, %32 : vector<8x128xf32>
    %34 = arith.addf %28, %33 : vector<8x128xf32>
    %cst = arith.constant 0.000000e+00 : f32
    %35 = vector.broadcast %cst : f32 to vector<8x128xf32>
    %36 = arith.maximumf %34, %35 : vector<8x128xf32>
    %37 = arith.truncf %36 : vector<8x128xf32> to vector<8x128xbf16>
    %cst_6 = arith.constant dense<0.000000e+00> : vector<8x128xf32>
    %38 = tpu.matmul %37, %5, %cst_6 {dimension_numbers = #tpu.dot_dimension_numbers<[1], [0], [0], [1], [0, 0, 1, 1], [], []>} : vector<8x128xbf16>, vector<128x128xbf16>, vector<8x128xf32> -> vector<8x128xf32>
    %39 = vector.broadcast %8 : vector<1x128xf32> to vector<8x128xf32>
    %40 = arith.addf %38, %39 : vector<8x128xf32>
    %cst_7 = arith.constant 0.000000e+00 : f32
    %41 = vector.broadcast %cst_7 : f32 to vector<8x128xf32>
    %42 = arith.maximumf %40, %41 : vector<8x128xf32>
    %43 = arith.truncf %42 : vector<8x128xf32> to vector<8x128xbf16>
    %cst_8 = arith.constant dense<0.000000e+00> : vector<8x128xf32>
    %44 = tpu.matmul %43, %6, %cst_8 {dimension_numbers = #tpu.dot_dimension_numbers<[1], [0], [0], [1], [0, 0, 1, 1], [], []>} : vector<8x128xbf16>, vector<128x128xbf16>, vector<8x128xf32> -> vector<8x128xf32>
    %45 = vector.broadcast %9 : vector<1x128xf32> to vector<8x128xf32>
    %46 = arith.addf %44, %45 : vector<8x128xf32>
    %47 = vector.extract_strided_slice %46 {offsets = [0, 0], sizes = [8, 2], strides = [1, 1]} : vector<8x128xf32> to vector<8x2xf32>
    %c0_9 = arith.constant 0 : index
    %c0_10 = arith.constant 0 : index
    %48 = vector.load %arg3[%c0_9, %c0_10] : memref<8x2xf32, #tpu.memory_space<vmem>>, vector<8x2xf32>
    tpu.vector_store %arg3[%c0_9, %c0_10], %47 {strides = array<i32>} : memref<8x2xf32, #tpu.memory_space<vmem>>, vector<8x2xf32>,
    return
  }
  func.func @transform_0(%arg0: i32) -> (i32, i32) {
    %c0_i32 = arith.constant 0 : i32
    %c0_i32_0 = arith.constant 0 : i32
    return %arg0, %c0_i32 : i32, i32
  }
  func.func @transform_1(%arg0: i32) -> (i32, i32) {
    %c0_i32 = arith.constant 0 : i32
    %c0_i32_0 = arith.constant 0 : i32
    %c0_i32_1 = arith.constant 0 : i32
    return %c0_i32, %c0_i32_0 : i32, i32
  }
  func.func @transform_2(%arg0: i32) -> (i32, i32) {
    %c0_i32 = arith.constant 0 : i32
    %c0_i32_0 = arith.constant 0 : i32
    return %arg0, %c0_i32 : i32, i32
  }
}

</mosaic_0001>

<bundles_post_ra>
// kernel: _lambda_.1
= control target key start
LH: loop header
LB: loop body
LE: loop exit
PB: predicated region body
PF: predicated region fallthrough
CT: control target
= control target key end

     0   :  { %7 = vsyncpa [#allocation3], 0  ;;  %s431_s9 = smov [#allocation2]   ;;  %s491_s0 = inlined_call_operand.vmem [shape: f32[8,4], index: 0, kind: input, shape index: {}]   ;;  %s492_s1 = inlined_call_operand.hbm [shape: bf16[288,128], index: 1, kind: input, shape index: {}]   ;;  %s493_s2 = inlined_call_operand.vmem [shape: f32[8,2], index: 2, kind: output, shape index: {}]  }
   0x1   :  { %s15_s10 = sshll.u32 %s431_s9, 4  ;;  %s407_s13 = scalar_lea.hbm %s492_s1, 2304  ;;  %s16_s10 = int_to_ptr.vmem [resolvable:$true] %s15_s10 }
   0x2   :  { %p408_p0 = scmp.ne.s32.totalorder %s492_s1, %s407_s13  ;;  %p411_p1 = scmp.lt.u32.totalorder %s407_s13, %s492_s1 }
   0x4   :  { %p413_p2 = pnand %p411_p1, %p408_p0 }
   0x6   :  { %416 = shalt.err (!%p413_p2)
}
   0x7   :  { %s417_s18 = scalar_lea.vmem %s16_s10, 2304  ;;  %p422_p4 = scmp.lt.s32.totalorder %s16_s10, %s16_s10 }
   0x8   :  { %p418_p3 = scmp.ne.s32.totalorder %s16_s10, %s417_s18  ;;  %p423_p5 = scmp.lt.s32.totalorder %s417_s18, %s417_s18 }
   0xa   :  { %p424_p6 = por %p423_p5, %p422_p4 }
   0xc   :  { %p425_p7 = pnand %p424_p6, %p418_p3 }
   0xe   :  { %428 = shalt.err (!%p425_p7)
}
   0xf   :  { %s432_s19 = smov 64   ;;  %s433_s20 = smov 4  }
  0x10   :  { %21 = dma.hbm_to_vmem [thread:$0]  %s492_s1, 2304, %s16_s10, [#allocation3], %s432_s19, %s432_s19, %s433_s20  }
  0x11   :  { %429 = dma.done.wait [#allocation3], 2304  }
  0x12   :  { %430 = vsyncadd [#allocation3], 4294964992  ;;  %v434_v0 = vmov 0   ;;  %v435_v1 = vmov 2   ;;  %v436_v2 = vmov 0.0   ;;  %v26_v3 = vld [vmem:[%s491_s0] sm:$0xff]  ;;  %v68_v20 = vlaneseq }
  0x13   :  { %386 = vset.pattern.permute.xlu0 %v434_v0  ;;  %388 = vset.pattern.permute.xlu1 %v435_v1  ;;  %v391_v4 = vld [vmem:[#allocation2 + $0x10] sm:$0xff]   ;;  %v392_v5 = vld [vmem:[#allocation2 + $0x18] sm:$0xff]   ;;  %v437_v6 = vmov 1   ;;  %v438_v7 = vmov 3   ;;  %v393_v8 = vld [vmem:[#allocation2 + $0x20] sm:$0xff]   ;;  %vm439_vm0 = vmmov 0  }
  0x14   :  { %337 = vmatprep.subr.bf16.mxu0 %v436_v2  ;;  %357 = vmatprep.subr.bf16.mxu1 %v436_v2  ;;  %v394_v9 = vld [vmem:[#allocation2 + $0x28] sm:$0xff]   ;;  %v395_v10 = vld [vmem:[#allocation2 + $0x30] sm:$0xff]   ;;  %v396_v12 = vld [vmem:[#allocation2 + $0x38] sm:$0xff]   ;;  %v69_v21 = vshrl.u32 %v68_v20, 7  ;;  %vm296_vm1 = vcmask 15360  }
  0x15   :  { %65 = vperm.xlu0 %386, %v26_v3   ;;  %89 = vperm.xlu1 %388, %v26_v3   ;;  %v399_v11 = vld [vmem:[#allocation2 + $0x50] sm:$0xff]   ;;  %v400_v13 = vld [vmem:[#allocation2 + $0x58] sm:$0xff]   ;;  %v397_v14 = vld [vmem:[#allocation2 + $0x40] sm:$0xff]  }
  0x16   :  { %338 = vmatpush3.bf16.msra.mxu0 %v391_v4  ;;  %353 = vmatprep.mubr.msk.bf16.mxu0 %vm439_vm0, %v436_v2  ;;  %v401_v15 = vld [vmem:[#allocation2 + $0x60] sm:$0xff]   ;;  %v398_v16 = vld [vmem:[#allocation2 + $0x48] sm:$0xff]   ;;  %v403_v18 = vld [vmem:[#allocation2 + $0x70] sm:$0xff]   ;;  %v70_v24 = vsub.s32 0, %v69_v21  ;;  %v84_v27 = vsub.s32 1, %v69_v21  ;;  %v94_v29 = vsub.s32 2, %v69_v21 }
  0x17   :  { %339 = vmatprep.subr.bf16.mxu0 %v436_v2  ;;  %373 = vmatprep.mubr.msk.bf16.mxu1 %vm439_vm0, %v436_v2  ;;  %v402_v17 = vld [vmem:[#allocation2 + $0x68] sm:$0xff]   ;;  %v404_v19 = vld [vmem:[#allocation2 + $0x78] sm:$0xff]   ;;  %v104_v31 = vsub.s32 3, %v69_v21  ;;  %v405_v48 = vld [vmem:[#allocation2 + $0x80] sm:$0xff]  }
  0x18   :  { %358 = vmatpush3.bf16.msra.mxu1 %v399_v11  ;;  %v27_v22 = vld [vmem:[#allocation2] ss:$8 sps:$4 sm:$0xff]  }
  0x19   :  { %387 = vset.pattern.permute.xlu0 %v437_v6  ;;  %389 = vset.pattern.permute.xlu1 %v438_v7  ;;  %v28_v23 = vunpack.c.l.bf16 %v27_v22  ;;  %v30_v25 = vunpack.c.h.bf16 %v27_v22  ;;  %v406_v49 = vld [vmem:[#allocation2 + $0x88] sm:$0xff]  }
  0x1a   :  { %79 = vperm.xlu0 %387, %v26_v3   ;;  %99 = vperm.xlu1 %389, %v26_v3  }
  0x1b   :  { %340 = vmatpush3.bf16.msra.mxu0 %v392_v5  ;;  %359 = vmatprep.subr.bf16.mxu1 %v436_v2  ;;  %v71_v26 = vrot.slane %v28_v23, %v70_v24  ;;  %v76_v32 = vrot.slane %v30_v25, %v70_v24  ;;  %v85_v34 = vrot.slane %v28_v23, %v84_v27 }
  0x1c   :  { %341 = vmatprep.subr.bf16.mxu0 %v436_v2  ;;  %360 = vmatpush3.bf16.msra.mxu1 %v400_v13  ;;  %v95_v35 = vrot.slane %v28_v23, %v94_v29  ;;  %v105_v36 = vrot.slane %v28_v23, %v104_v31  ;;  %v113_v50 = vrot.slane %v30_v25, %v84_v27 }
  0x1d   :  { %361 = vmatprep.subr.bf16.mxu1 %v436_v2  ;;  %v207_v58 = vrot.slane %v30_v25, %v94_v29 }
  0x1e   :  { %390 = vset.pattern.permute.xlu0 %v438_v7 }
  0x1f   :  { %342 = vmatpush3.bf16.msra.mxu0 %v393_v8 }
  0x20   :  { %343 = vmatprep.subr.bf16.mxu0 %v436_v2  ;;  %362 = vmatpush3.bf16.msra.mxu1 %v401_v15 }
  0x21   :  { %363 = vmatprep.subr.bf16.mxu1 %v436_v2 }
  0x23   :  { %344 = vmatpush3.bf16.msra.mxu0 %v394_v9 }
  0x24   :  { %345 = vmatprep.subr.bf16.mxu0 %v436_v2  ;;  %364 = vmatpush3.bf16.msra.mxu1 %v402_v17 }
  0x25   :  { %365 = vmatprep.subr.bf16.mxu1 %v436_v2 }
  0x27   :  { %346 = vmatpush3.bf16.msra.mxu0 %v395_v10 }
  0x28   :  { %347 = vmatprep.subr.bf16.mxu0 %v436_v2  ;;  %366 = vmatpush3.bf16.msra.mxu1 %v403_v18 }
  0x29   :  { %367 = vmatprep.subr.bf16.mxu1 %v436_v2 }
  0x2b   :  { %348 = vmatpush3.bf16.msra.mxu0 %v396_v12 }
  0x2c   :  { %349 = vmatprep.subr.bf16.mxu0 %v436_v2  ;;  %368 = vmatpush3.bf16.msra.mxu1 %v404_v19 }
  0x2d   :  { %369 = vmatprep.subr.bf16.mxu1 %v436_v2 }
  0x2f   :  { %350 = vmatpush3.bf16.msra.mxu0 %v397_v14 }
  0x30   :  { %351 = vmatprep.subr.bf16.mxu0 %v436_v2  ;;  %370 = vmatpush3.bf16.msra.mxu1 %v405_v48 }
  0x31   :  { %371 = vmatprep.subr.bf16.mxu1 %v436_v2 }
  0x33   :  { %352 = vmatpush3.bf16.msra.mxu0 %v398_v16 }
  0x34   :  { %372 = vmatpush3.bf16.msra.mxu1 %v406_v49 }
  0x94   :  { %v66_v28 = vpop.permute.xlu0 %65  ;;  %v90_v30 = vpop.permute.xlu1 %89 }
  0x95   :  { %v72_v33 = vmul.f32 %v71_v26, %v66_v28  ;;  %v96_v41 = vmul.f32 %v95_v35, %v90_v30 }
  0x97   :  { %v77_v39 = vadd.f32 %v76_v32, %v72_v33 }
  0x99   :  { %v80_v37 = vpop.permute.xlu0 %79  ;;  %v100_v38 = vpop.permute.xlu1 %99 }
  0x9a   :  { %v86_v40 = vmul.f32 %v85_v34, %v80_v37  ;;  %v106_v43 = vmul.f32 %v105_v36, %v100_v38 }
  0x9c   :  { %v87_v42 = vadd.f32 %v86_v40, %v77_v39 }
  0x9e   :  { %v97_v44 = vadd.f32 %v96_v41, %v87_v42 }
  0xa0   :  { %v107_v45 = vadd.f32 %v106_v43, %v97_v44 }
  0xa2   :  { %v108_v46 = vmax.f32 %v107_v45, 0.0 }
  0xa4   :  { %v109_v47 = vpack.c.bf16 %v108_v46, %v108_v46 }
  0xa6   :  { %354 = vmatmul.mubr.bf16.vlgmr.msra.gmra.mrb[0].mxu0 %v109_v47 }
 0x179   :  { %v196_v51 = vpop.f32.mrb[0].mxu0 }
 0x17a   :  { %v197_v52 = vadd.f32 %v196_v51, %v113_v50  ;;  %v355_v53 = vpop.f32.mrb[1].mxu0 }
 0x17b   :  { %v199_v54 = vpop.f32.mrb[2].mxu0 }
 0x17c   :  { %v202_v55 = vmax.f32 %v197_v52, 0.0  ;;  %v356_v56 = vpop.f32.mrb[3].mxu0 }
 0x17e   :  { %v203_v57 = vpack.c.bf16 %v202_v55, %v202_v55 }
 0x180   :  { %374 = vmatmul.mubr.bf16.vlgmr.msra.gmra.mrb[0].mxu1 %v203_v57 }
 0x253   :  { %v290_v59 = vpop.f32.mrb[0].mxu1 }
 0x254   :  { %v291_v60 = vadd.f32 %v290_v59, %v207_v58  ;;  %v375_v61 = vpop.f32.mrb[1].mxu1 }
 0x255   :  { %v293_v62 = vpop.f32.mrb[2].mxu1 }
 0x256   :  { %297 = vst.msk [vmem:[%s493_s2] sm:$0xff] %vm296_vm1, %v291_v60  ;;  %v376_v63 = vpop.f32.mrb[3].mxu1 }
 0x257   :  { %302 = vsyncpa [#allocation3], 1 }

</bundles_post_ra>
